<compile_context>
chip_gen: v7x
topology: tpu7x:2x2x1
jax: 0.10.0
libtpu: 0.0.40
codegen_flags: <defaults>
</compile_context>

<pallas_src>
import functools

import jax
import jax.numpy as jnp
from jax import lax
from jax.experimental import pallas as pl
from jax.experimental.pallas import tpu as pltpu

_LANES = 512  # lane-dense last dim (multiple of 128)


def _round_up(x, m):
    return ((x + m - 1) // m) * m


def _default_tile_rows():
    """Chip-aware row-tile: big enough to amortize ~0.35us/grid-step overhead."""
    try:
        kind = jax.devices()[0].device_kind.lower()
    except Exception:
        return 1024
    if "v7" in kind or "7x" in kind:
        return 2048   # 2 x 4 MiB f32 blocks x 2 buffers = 16 MiB < 32 MiB scoped VMEM
    return 1024       # 2 x 2 MiB f32 blocks x 2 buffers =  8 MiB < 16 MiB (v5e) scoped


def _bce_kernel(p_ref, y_ref, o_ref, acc_ref, *, neg_inv_n, tile_rows, lanes,
                last_block_valid_rows, binary_labels):
    """Streams [tile_rows, lanes] blocks; accumulates sum of per-element BCE terms."""
    k = pl.program_id(0)
    last = pl.num_programs(0) - 1

    @pl.when(k == 0)
    def _init():
        acc_ref[...] = jnp.zeros_like(acc_ref)

    # Ragged last row-block (zero-copy path only): rows past the end of the
    # input hold unspecified data -> zero them once, on that block only.
    if last_block_valid_rows != tile_rows:  # static trace-time condition
        @pl.when(k == last)
        def _fixup():
            row = lax.broadcasted_iota(jnp.int32, (tile_rows, lanes), 0)
            keep = row < last_block_valid_rows
            p_ref[...] = jnp.where(keep, p_ref[...], 0.0)
            y_ref[...] = jnp.where(keep, y_ref[...], 0.0)

    p = p_ref[...]
    y = y_ref[...]

    # Padded elements are (p=0, y=0) and contribute exactly 0 in either branch,
    # so no per-step masking is needed.  Clamp at -100 keeps saturated
    # predictions finite (torch.nn.BCELoss convention).
    if binary_labels:
        # One transcendental per element (valid only for hard {0,1} labels).
        q = jnp.where(y != 0.0, p, 1.0 - p)
        term = jnp.maximum(jnp.log(q), -100.0)
    else:
        # Exact for soft targets: y*log(p) + (1-y)*log(1-p).
        log_p = jnp.maximum(jnp.log(p), -100.0)
        log_1mp = jnp.maximum(jnp.log1p(-p), -100.0)
        term = log_1mp + y * (log_p - log_1mp)

    # Vector accumulate: per-step sublane reduce only; the single cross-lane
    # reduce + scalar store + normalization happen once, at the end.
    acc_ref[...] += jnp.sum(term, axis=0, keepdims=True)

    @pl.when(k == last)
    def _finalize():
        o_ref[...] = jnp.reshape(jnp.sum(acc_ref[...]) * neg_inv_n, (1, 1))


def binary_cross_entropy_loss(predicts, labels, *, binary_labels=False,
                              tile_rows=None):
    """predicts: [N, 1], labels: [N, 1] -> loss: [1] (matches the PyTorch module).

    binary_labels=True enables the one-log fast path (only valid for hard {0,1}
    labels); the default two-log path handles soft targets exactly.
    """
    n = predicts.shape[0]
    lanes = _LANES

    # [N,1] -> [N] is a free bitcast; astype is a no-op for f32 inputs.
    p_flat = predicts.reshape(-1).astype(jnp.float32)
    y_flat = labels.reshape(-1).astype(jnp.float32)

    pad = (-n) % lanes
    if pad:
        # Pad value 0.0 contributes exactly 0 to the sum -> no in-kernel mask.
        p_flat = jnp.pad(p_flat, (0, pad))
        y_flat = jnp.pad(y_flat, (0, pad))
    rows = (n + pad) // lanes
    p2 = p_flat.reshape(rows, lanes)   # pure bitcast when pad == 0 (no HBM copy)
    y2 = y_flat.reshape(rows, lanes)

    tile_target = (_default_tile_rows() if tile_rows is None
                   else max(8, _round_up(tile_rows, 8)))
    if rows <= tile_target:
        tr = rows              # single block == full array (any row count is legal)
        nblocks = 1
        last_valid = rows
    else:
        tr = tile_target       # multiple of 8
        nblocks = pl.cdiv(rows, tr)
        last_valid = rows - (nblocks - 1) * tr   # < tr only in the zero-copy path

    kernel = functools.partial(
        _bce_kernel,
        neg_inv_n=-1.0 / n,
        tile_rows=tr,
        lanes=lanes,
        last_block_valid_rows=last_valid,
        binary_labels=binary_labels,
    )

    out = pl.pallas_call(
        kernel,
        out_shape=jax.ShapeDtypeStruct((1, 1), jnp.float32),
        grid=(nblocks,),
        in_specs=[
            pl.BlockSpec((tr, lanes), lambda k: (k, 0)),
            pl.BlockSpec((tr, lanes), lambda k: (k, 0)),
        ],
        out_specs=pl.BlockSpec((1, 1), lambda k: (0, 0)),
        scratch_shapes=[pltpu.VMEM((1, lanes), jnp.float32)],
        compiler_params=pltpu.CompilerParams(
            dimension_semantics=("arbitrary",),
            # Lets XLA fuse the (rare) pad producer into the pallas call instead
            # of materializing a padded copy of each input in HBM.
            allow_input_fusion=[True, True],
        ),
    )(p2, y2)

    # torch.squeeze(loss, axis=1): [1, 1] -> [1]
    return out.reshape(1)


def _reference(predicts, labels):
    """Literal jnp transcription of the PyTorch forward."""
    n = predicts.shape[0]
    loss = (-1.0 / n) * (
        jnp.matmul(labels.T, jnp.log(predicts), precision="highest")
        + jnp.matmul(1.0 - labels.T, jnp.log(1.0 - predicts), precision="highest"))
    return jnp.squeeze(loss, axis=1)


if __name__ == "__main__":
    key = jax.random.PRNGKey(0)

    # Cases cover: padded path (N % 512 != 0), zero-copy path (N % 512 == 0),
    # and multi-block tiling with a ragged last block (tile_rows override).
    cases = [(8, None), (3000, None), (2048, None), (5120, 8)]
    for n, tr in cases:
        k1, k2 = jax.random.split(jax.random.fold_in(key, n))
        predicts = jax.nn.sigmoid(jax.random.normal(k1, (n, 1), dtype=jnp.float32))
        labels = jax.random.bernoulli(k2, p=0.5, shape=(n, 1)).astype(jnp.float32)

        ref = _reference(predicts, labels)
        for binary in (False, True):
            loss = jax.block_until_ready(
                binary_cross_entropy_loss(predicts, labels,
                                          binary_labels=binary, tile_rows=tr))
            assert loss.shape == (1,), loss.shape
            assert jnp.allclose(loss, ref, atol=1e-5, rtol=1e-5), (n, tr, binary, loss, ref)

    print("KERNEL_OK")
</pallas_src>

<mosaic_0001>
module attributes {stable_mosaic.version = 11 : i64} {
  func.func @_bce_kernel(%arg0: i32, %arg1: memref<1x512xf32, #tpu.memory_space<vmem>>, %arg2: memref<1x512xf32, #tpu.memory_space<vmem>>, %arg3: memref<1x1xf32, #tpu.memory_space<vmem>>, %arg4: memref<1x512xf32, #tpu.memory_space<vmem>>) attributes {dimension_semantics = [#tpu.dimension_semantics<arbitrary>], iteration_bounds = array<i64: 1>, scalar_prefetch = 0 : i64, scratch_operands = 1 : i64, tpu.core_type = #tpu.core_type<tc>, window_params = [{transform_indices = @transform_0, window_bounds = array<i64: 1, 512>}, {transform_indices = @transform_1, window_bounds = array<i64: 1, 512>}, {pipeline_mode = #tpu.pipeline_mode<synchronous>, transform_indices = @transform_2, window_bounds = array<i64: 1, 1>}]} {
    %c0_i32 = arith.constant 0 : i32
    %0 = arith.cmpi eq, %arg0, %c0_i32 : i32
    %1 = arith.extui %0 : i1 to i32
    %c0_i32_0 = arith.constant 0 : i32
    %2 = arith.cmpi ne, %1, %c0_i32_0 : i32
    scf.if %2 {
      %cst_13 = arith.constant 0.000000e+00 : f32
      %24 = vector.broadcast %cst_13 : f32 to vector<1x512xf32>
      %c0_14 = arith.constant 0 : index
      %c0_15 = arith.constant 0 : index
      %25 = vector.load %arg4[%c0_14, %c0_15] : memref<1x512xf32, #tpu.memory_space<vmem>>, vector<1x512xf32>
      tpu.vector_store %arg4[%c0_14, %c0_15], %24 {strides = array<i32>} : memref<1x512xf32, #tpu.memory_space<vmem>>, vector<1x512xf32>,
    } else {
    }
    %c0 = arith.constant 0 : index
    %c0_1 = arith.constant 0 : index
    %3 = vector.load %arg1[%c0, %c0_1] : memref<1x512xf32, #tpu.memory_space<vmem>>, vector<1x512xf32>
    %c0_2 = arith.constant 0 : index
    %c0_3 = arith.constant 0 : index
    %4 = vector.load %arg2[%c0_2, %c0_3] : memref<1x512xf32, #tpu.memory_space<vmem>>, vector<1x512xf32>
    %5 = math.log %3 : vector<1x512xf32>
    %cst = arith.constant -1.000000e+02 : f32
    %6 = vector.broadcast %cst : f32 to vector<1x512xf32>
    %7 = arith.maximumf %5, %6 : vector<1x512xf32>
    %cst_4 = arith.constant 0.000000e+00 : f32
    %8 = vector.broadcast %cst_4 : f32 to vector<1x512xf32>
    %9 = arith.subf %8, %3 : vector<1x512xf32>
    %10 = math.log1p %9 : vector<1x512xf32>
    %cst_5 = arith.constant -1.000000e+02 : f32
    %11 = vector.broadcast %cst_5 : f32 to vector<1x512xf32>
    %12 = arith.maximumf %10, %11 : vector<1x512xf32>
    %13 = arith.subf %7, %12 : vector<1x512xf32>
    %14 = arith.mulf %4, %13 : vector<1x512xf32>
    %15 = arith.addf %12, %14 : vector<1x512xf32>
    %c0_6 = arith.constant 0 : index
    %c0_7 = arith.constant 0 : index
    %16 = vector.load %arg4[%c0_6, %c0_7] : memref<1x512xf32, #tpu.memory_space<vmem>>, vector<1x512xf32>
    %cst_8 = arith.constant dense<0.000000e+00> : vector<512xf32>
    %17 = vector.multi_reduction <add>, %15, %cst_8 [0] : vector<1x512xf32> to vector<512xf32>
    %18 = vector.shape_cast %17 : vector<512xf32> to vector<1x512xf32>
    %19 = arith.addf %16, %18 : vector<1x512xf32>
    %c0_9 = arith.constant 0 : index
    %c0_10 = arith.constant 0 : index
    %20 = vector.load %arg4[%c0_9, %c0_10] : memref<1x512xf32, #tpu.memory_space<vmem>>, vector<1x512xf32>
    tpu.vector_store %arg4[%c0_9, %c0_10], %19 {strides = array<i32>} : memref<1x512xf32, #tpu.memory_space<vmem>>, vector<1x512xf32>,
    %c0_i32_11 = arith.constant 0 : i32
    %21 = arith.cmpi eq, %arg0, %c0_i32_11 : i32
    %22 = arith.extui %21 : i1 to i32
    %c0_i32_12 = arith.constant 0 : i32
    %23 = arith.cmpi ne, %22, %c0_i32_12 : i32
    scf.if %23 {
      %c0_13 = arith.constant 0 : index
      %c0_14 = arith.constant 0 : index
      %24 = vector.load %arg4[%c0_13, %c0_14] : memref<1x512xf32, #tpu.memory_space<vmem>>, vector<1x512xf32>
      %25 = vector.shape_cast %24 : vector<1x512xf32> to vector<1x1x512xf32>
      %cst_15 = arith.constant dense<0.000000e+00> : vector<1xf32>
      %26 = vector.multi_reduction <add>, %25, %cst_15 [1, 2] : vector<1x1x512xf32> to vector<1xf32>
      %27 = vector.shape_cast %26 : vector<1xf32> to vector<1x1x1xf32>
      %28 = vector.extract %27[0, 0, 0] : f32 from vector<1x1x1xf32>
      %cst_16 = arith.constant -1.250000e-01 : f32
      %29 = arith.mulf %28, %cst_16 : f32
      %30 = vector.broadcast %29 : f32 to vector<1x1xf32>
      %c0_17 = arith.constant 0 : index
      %c0_18 = arith.constant 0 : index
      %31 = vector.load %arg3[%c0_17, %c0_18] : memref<1x1xf32, #tpu.memory_space<vmem>>, vector<1x1xf32>
      tpu.vector_store %arg3[%c0_17, %c0_18], %30 {strides = array<i32>} : memref<1x1xf32, #tpu.memory_space<vmem>>, vector<1x1xf32>,
    } else {
    }
    return
  }
  func.func @transform_0(%arg0: i32) -> (i32, i32) {
    %c0_i32 = arith.constant 0 : i32
    %c0_i32_0 = arith.constant 0 : i32
    return %arg0, %c0_i32 : i32, i32
  }
  func.func @transform_1(%arg0: i32) -> (i32, i32) {
    %c0_i32 = arith.constant 0 : i32
    %c0_i32_0 = arith.constant 0 : i32
    return %arg0, %c0_i32 : i32, i32
  }
  func.func @transform_2(%arg0: i32) -> (i32, i32) {
    %c0_i32 = arith.constant 0 : i32
    %c0_i32_0 = arith.constant 0 : i32
    %c0_i32_1 = arith.constant 0 : i32
    return %c0_i32, %c0_i32_0 : i32, i32
  }
}

</mosaic_0001>

<bundles_post_ra>
// kernel: tpu_custom_call.1
= control target key start
LH: loop header
LB: loop body
LE: loop exit
PB: predicated region body
PF: predicated region fallthrough
CT: control target
= control target key end

     0   :  { %7 = vsyncpa [#allocation4], 0  ;;  %s279_s0 = inlined_call_operand.hbm [shape: f32[1,512], index: 0, kind: input, shape index: {}]   ;;  %s280_s1 = inlined_call_operand.hbm [shape: f32[1,512], index: 1, kind: input, shape index: {}]   ;;  %s281_s2 = inlined_call_operand.hbm [shape: f32[1,1], index: 2, kind: output, shape index: {}]  }
   0x1   :  { %8 = vsyncpa [#allocation7], 0 }
   0x2   :  { %9 = vsyncpa [#allocation5], 0  ;;  %s216_s9 = smov [#allocation3]   ;;  %s217_s11 = smov [#allocation6]  }
   0x3   :  { %s16_s10 = sshll.u32 %s216_s9, 4  ;;  %s26_s12 = sshll.u32 %s217_s11, 4  ;;  %s17_s10 = int_to_ptr.vmem [resolvable:$true] %s16_s10  ;;  %s27_s12 = int_to_ptr.vmem [resolvable:$true] %s26_s12 }
   0x4   :  { %s144_s15 = scalar_lea.hbm %s279_s0, 64 }
   0x5   :  { %p145_p0 = scmp.ne.s32.totalorder %s279_s0, %s144_s15  ;;  %p148_p1 = scmp.lt.u32.totalorder %s144_s15, %s279_s0 }
   0x7   :  { %p150_p2 = pnand %p148_p1, %p145_p0 }
   0x9   :  { %153 = shalt.err (!%p150_p2)
}
   0xa   :  { %s154_s20 = scalar_lea.vmem %s17_s10, 64  ;;  %p159_p4 = scmp.lt.s32.totalorder %s17_s10, %s17_s10 }
   0xb   :  { %p155_p3 = scmp.ne.s32.totalorder %s17_s10, %s154_s20  ;;  %p160_p5 = scmp.lt.s32.totalorder %s154_s20, %s154_s20 }
   0xd   :  { %p161_p6 = por %p160_p5, %p159_p4 }
   0xf   :  { %p162_p7 = pnand %p161_p6, %p155_p3 }
  0x11   :  { %165 = shalt.err (!%p162_p7)
}
  0x12   :  { %19 = dma.hbm_to_vmem [thread:$0]  %s279_s0, 64, %s17_s10, [#allocation4]  }
  0x13   :  { %s166_s25 = scalar_lea.hbm %s280_s1, 64 }
  0x14   :  { %p167_p8 = scmp.ne.s32.totalorder %s280_s1, %s166_s25  ;;  %p170_p9 = scmp.lt.u32.totalorder %s166_s25, %s280_s1 }
  0x16   :  { %p172_p10 = pnand %p170_p9, %p167_p8 }
  0x18   :  { %175 = shalt.err (!%p172_p10)
}
  0x19   :  { %s176_s30 = scalar_lea.vmem %s27_s12, 64  ;;  %p181_p12 = scmp.lt.s32.totalorder %s27_s12, %s27_s12 }
  0x1a   :  { %p177_p11 = scmp.ne.s32.totalorder %s27_s12, %s176_s30  ;;  %p182_p13 = scmp.lt.s32.totalorder %s176_s30, %s176_s30 }
  0x1c   :  { %p183_p0 = por %p182_p13, %p181_p12 }
  0x1e   :  { %p184_p1 = pnand %p183_p0, %p177_p11 }
  0x20   :  { %187 = shalt.err (!%p184_p1)
}
  0x21   :  { %29 = dma.hbm_to_vmem [thread:$0]  %s280_s1, 64, %s27_s12, [#allocation7]  }
  0x22   :  { %210 = dma.done.wait [#allocation4], 64  }
  0x23   :  { %211 = vsyncadd [#allocation4], 4294967232 }
  0x24   :  { %212 = dma.done.wait [#allocation7], 64  }
  0x25   :  { %213 = vsyncadd [#allocation7], 4294967232  ;;  %v40_v0 = vlaneseq  ;;  %v218_v2 = vmov 0.0   ;;  %v45_v3 = vld [vmem:[#allocation3] sm:$0xf]  ;;  %vm97_vm2 = vcmask 1040384  }
  0x26   :  { %140 = vlog2.f32 %v45_v3  ;;  %v50_v4 = vsub.f32 0.0, %v45_v3  ;;  %v46_v17 = vld [vmem:[#allocation6] sm:$0xf]  ;;  %s219_s1 = smov [#allocation8]   ;;  %vm116_vm3 = vcmask 0  }
  0x27   :  { %vm259_vm0 = vcmp.lt.s32.totalorder %v40_v0, 512  ;;  %v78_v23 = vshrl.u32 %v40_v0, 7  ;;  %s124_s4 = sshll.u32 %s219_s1, 4  ;;  %s125_s4 = int_to_ptr.vmem [resolvable:$true] %s124_s4 }
  0x28   :  { %44 = vst.msk [vmem:[#allocation2] sm:$0xf] %vm259_vm0, %v218_v2  ;;  %v51_v5 = vadd.f32 1.0, %v50_v4  ;;  %v54_v6 = vmul.f32 -0.5, %v50_v4  ;;  %v57_v9 = vand.u32 2147483647, %v50_v4  ;;  %p193_p3 = scmp.lt.s32.totalorder %s125_s4, %s125_s4 }
  0x29   :  { %v79_v24 = vsub.s32 0, %v78_v23  ;;  %v83_v25 = vsub.s32 1, %v78_v23  ;;  %v87_v26 = vsub.s32 2, %v78_v23  ;;  %v91_v27 = vsub.s32 3, %v78_v23  ;;  %s188_s7 = scalar_lea.vmem %s125_s4, 16  ;;  %s192_s8 = scalar_lea.vmem %s125_s4, 32 }
  0x2a   :  { %142 = vlog2.f32 %v51_v5  ;;  %v55_v7 = vadd.f32 1.0, %v54_v6  ;;  %vm58_vm1 = vcmp.lt.f32.partialorder %v57_v9, 0.0004427343  ;;  %p189_p2 = scmp.ne.s32.totalorder %s125_s4, %s188_s7  ;;  %p194_p4 = scmp.lt.s32.totalorder %s192_s8, %s188_s7 }
  0x2c   :  { %v56_v11 = vmul.f32 %v55_v7, %v50_v4  ;;  %p195_p5 = por %p194_p4, %p193_p3 }
  0x2e   :  { %p196_p6 = pnand %p195_p5, %p189_p2 }
  0x2f   :  { %v64_v20 = vld [vmem:[#allocation2] sm:$0xf] }
  0x30   :  { %v141_v8 = vpop.eup %140 }
  0x31   :  { %v48_v10 = vmul.f32 0.6931472, %v141_v8 }
  0x33   :  { %v49_v14 = vmax.f32 %v48_v10, -100.0 }
  0x34   :  { %v143_v12 = vpop.eup %142 }
  0x35   :  { %v53_v13 = vmul.f32 0.6931472, %v143_v12 }
  0x37   :  { %v59_v15 = vsel %vm58_vm1, %v56_v11, %v53_v13 }
  0x38   :  { %v60_v16 = vmax.f32 %v59_v15, -100.0 }
  0x3a   :  { %v61_v18 = vsub.f32 %v49_v14, %v60_v16 }
  0x3c   :  { %v62_v19 = vmul.f32 %v61_v18, %v46_v17 }
  0x3e   :  { %v63_v21 = vadd.f32 %v62_v19, %v60_v16 }
  0x40   :  { %v66_v22 = vadd.f32 %v64_v20, %v63_v21 }
  0x42   :  { %71 = vst.msk [vmem:[#allocation2] sm:$0xf] %vm259_vm0, %v66_v22 }
  0x49   :  { %v75_v28 = vld [vmem:[#allocation2] sm:$0xf] }
  0x4a   :  { %v80_v29 = vrot.slane %v75_v28, %v79_v24  ;;  %v84_v30 = vrot.slane %v75_v28, %v83_v25  ;;  %v88_v31 = vrot.slane %v75_v28, %v87_v26  ;;  %v92_v32 = vrot.slane %v75_v28, %v91_v27 }
  0x4c   :  { %v98_v33 = vsel %vm97_vm2, %v80_v29, 0.0  ;;  %v99_v34 = vsel %vm97_vm2, %v84_v30, 0.0  ;;  %v101_v35 = vsel %vm97_vm2, %v88_v31, 0.0  ;;  %v103_v37 = vsel %vm97_vm2, %v92_v32, 0.0 }
  0x4d   :  { %v100_v36 = vadd.f32 %v99_v34, %v98_v33 }
  0x4f   :  { %v102_v38 = vadd.f32 %v101_v35, %v100_v36 }
  0x51   :  { %v104_v39 = vadd.f32 %v103_v37, %v102_v38 }
  0x53   :  { %105 = vadd.xlane.f32.xlu0 %v104_v39 }
  0xe0   :  { %v106_v40 = vpop.xlane.xlu0 %105 }
  0xe1   :  { %v107_v41 = vrot.slane %v106_v40, 4 }
  0xe3   :  { %v108_v42 = vadd.f32 %v107_v41, %v106_v40 }
  0xe5   :  { %v109_v43 = vrot.slane %v108_v42, 2 }
  0xe7   :  { %v110_v44 = vadd.f32 %v109_v43, %v108_v42 }
  0xe9   :  { %v111_v45 = vrot.slane %v110_v44, 1 }
  0xeb   :  { %v112_v46 = vadd.f32 %v111_v45, %v110_v44 }
  0xed   :  { %134 = vpush %v112_v46 }
 0x11e   :  { %s135_s5 = spop %134 }
 0x11f   :  { %s114_s6 = smul.f32 -0.125, %s135_s5 }
 0x121   :  { %v115_v47 = vstv %s114_s6 }
 0x122   :  { %117 = vst.msk [vmem:[#allocation8] sm:$0x1] %vm116_vm3, %v115_v47 }
 0x123   :  { %199 = shalt.err (!%p196_p6)
}
 0x124   :  { %s200_s11 = scalar_lea.hbm %s281_s2, 16 }
 0x125   :  { %p201_p7 = scmp.ne.s32.totalorder %s281_s2, %s200_s11  ;;  %p204_p8 = scmp.lt.u32.totalorder %s200_s11, %s281_s2 }
 0x127   :  { %p206_p9 = pnand %p204_p8, %p201_p7 }
 0x129   :  { %209 = shalt.err (!%p206_p9)
}
 0x12a   :  { %127 = dma.vmem_to_hbm [thread:$0]  %s125_s4, 16, %s281_s2, [#allocation5]  }
 0x12b   :  { %214 = dma.done.wait [#allocation5], 16  }
 0x12c   :  { %215 = vsyncadd [#allocation5], 4294967280 }
 0x12d   :  { %131 = vsyncpa [#allocation4], 1 }
 0x12e   :  { %132 = vsyncpa [#allocation7], 1 }
 0x12f   :  { %133 = vsyncpa [#allocation5], 1 }

</bundles_post_ra>
